<compile_context>
chip_gen: v5e
topology: v5e:2x2
jax: 0.10.0
libtpu: 0.0.40
codegen_flags: <defaults>
</compile_context>

<pallas_src>
import functools

import jax
import jax.numpy as jnp
from jax.experimental import pallas as pl
from jax.experimental.pallas import tpu as pltpu

HIDDEN = 256  # nn.Linear(z_dim, 256)


def _round_up(n, m):
    return (n + m - 1) // m * m


def generator_kernel(x_ref, w1_ref, b1_ref, w2_ref, b2_ref, o_ref):
    # Linear(z_dim, 256): cast x to bf16 in-kernel (x stays f32 in HBM, tiny),
    # bf16 operands, f32 MXU accumulation.
    x = x_ref[...].astype(w1_ref.dtype)
    h = jnp.dot(x, w1_ref[...], preferred_element_type=jnp.float32)
    h = h + b1_ref[...]                          # (bm, 256) + (1, 256), f32
    # LeakyReLU(negative_slope=0.1) in f32 (no bf16 VPU on v5e).
    h = jnp.where(h > 0, h, 0.1 * h)
    # Linear(256, img_dim_padded): activations back to bf16 for the MXU.
    y = jnp.dot(h.astype(w2_ref.dtype), w2_ref[...],
                preferred_element_type=jnp.float32)
    y = y + b2_ref[...]                          # (bm, 896) + (1, 896), f32
    # Tanh in f32 on the EUP, bf16 lane-dense unmasked store.
    o_ref[...] = jnp.tanh(y).astype(o_ref.dtype)


def prepare_generator_params(w1, b1, w2, b2):
    """One-time weight plumbing (do NOT call per forward):
    cast W1/W2 to bf16, lane-pad the output dim (784 -> 896), keep biases f32.
    """
    z_dim, hidden = w1.shape
    img_dim = w2.shape[1]
    assert hidden % 128 == 0, "hidden must be a multiple of 128"
    n_pad = _round_up(img_dim, 128)

    w1p = jnp.asarray(w1, jnp.bfloat16)                                   # (z_dim, 256)
    b1p = jnp.asarray(b1, jnp.float32).reshape(1, hidden)                 # (1, 256)
    w2p = (jnp.zeros((hidden, n_pad), jnp.bfloat16)
           .at[:, :img_dim].set(jnp.asarray(w2, jnp.bfloat16)))           # (256, 896)
    b2p = (jnp.zeros((1, n_pad), jnp.float32)
           .at[:, :img_dim].set(jnp.asarray(b2, jnp.float32).reshape(1, img_dim)))
    return (w1p, b1p, w2p, b2p, img_dim)


def generator_forward(x, params, *, block_b=512, min_tiles=2,
                      out_dtype=jnp.bfloat16, slice_output=True):
    """x: (B, z_dim) f32; params: output of prepare_generator_params.

    block_b:   max batch tile (512 amortizes per-step overhead on v6e/v7x;
               256 is plenty on v5e's 4x128^2 MXU).
    min_tiles: >= 2 keeps both v7x TensorCores busy via the "parallel" axis.
    """
    w1p, b1p, w2p, b2p, img_dim = params
    B, z_dim = x.shape
    hidden = w1p.shape[1]
    n_pad = w2p.shape[1]

    # Batch (M) tiling: minimize padding while guaranteeing >= min_tiles steps.
    n_tiles = max(min_tiles, pl.cdiv(B, block_b))
    bm = _round_up(pl.cdiv(B, n_tiles), 8)
    b_pad = n_tiles * bm

    # The only per-call wrapper op (skipped when B is already tile-aligned).
    xp = x if b_pad == B else jnp.zeros((b_pad, z_dim), x.dtype).at[:B, :].set(x)

    flops = 2 * b_pad * (z_dim * hidden + hidden * n_pad)
    bytes_accessed = (b_pad * z_dim * 4            # x (f32)
                      + w1p.size * 2 + w2p.size * 2
                      + b1p.size * 4 + b2p.size * 4
                      + b_pad * n_pad * jnp.dtype(out_dtype).itemsize)

    out = pl.pallas_call(
        generator_kernel,
        out_shape=jax.ShapeDtypeStruct((b_pad, n_pad), out_dtype),
        grid_spec=pltpu.PrefetchScalarGridSpec(
            num_scalar_prefetch=0,
            grid=(n_tiles,),
            in_specs=[
                # batch tile marches over the grid axis; z_dim is full-extent
                pl.BlockSpec((bm, z_dim), lambda i: (i, 0)),
                # weights / biases: constant block index -> VMEM-resident
                pl.BlockSpec((z_dim, hidden), lambda i: (0, 0)),
                pl.BlockSpec((1, hidden), lambda i: (0, 0)),
                pl.BlockSpec((hidden, n_pad), lambda i: (0, 0)),
                pl.BlockSpec((1, n_pad), lambda i: (0, 0)),
            ],
            out_specs=pl.BlockSpec((bm, n_pad), lambda i: (i, 0)),
        ),
        compiler_params=pltpu.CompilerParams(
            dimension_semantics=("parallel",)),    # batch tiles shard across TCs
        cost_estimate=pl.CostEstimate(
            flops=flops,
            transcendentals=b_pad * n_pad,         # tanh
            bytes_accessed=bytes_accessed),
    )(xp, w1p, b1p, w2p, b2p)

    if slice_output:
        return out[:B, :img_dim]
    # Caller slices / reshapes lazily (keeps the 896-lane layout; avoids an
    # extra HBM copy on an output-store-bound kernel).
    return out


def init_generator_params(key, z_dim, img_dim, hidden=HIDDEN):
    """Deterministic PyTorch-style Linear init: U(-1/sqrt(fan_in), 1/sqrt(fan_in))."""
    k1, k2, k3, k4 = jax.random.split(key, 4)
    bound1 = 1.0 / (z_dim ** 0.5)
    bound2 = 1.0 / (hidden ** 0.5)
    w1 = jax.random.uniform(k1, (z_dim, hidden), jnp.float32, -bound1, bound1)
    b1 = jax.random.uniform(k2, (1, hidden), jnp.float32, -bound1, bound1)
    w2 = jax.random.uniform(k3, (hidden, img_dim), jnp.float32, -bound2, bound2)
    b2 = jax.random.uniform(k4, (1, img_dim), jnp.float32, -bound2, bound2)
    return w1, b1, w2, b2


def reference_forward(x, w1, b1, w2, b2):
    """Pure-JAX reference with the same bf16-matmul / f32-accumulate numerics."""
    h = jnp.dot(x.astype(jnp.bfloat16), w1.astype(jnp.bfloat16),
                preferred_element_type=jnp.float32) + b1.reshape(1, -1)
    h = jnp.where(h > 0, h, 0.1 * h)
    y = jnp.dot(h.astype(jnp.bfloat16), w2.astype(jnp.bfloat16),
                preferred_element_type=jnp.float32) + b2.reshape(1, -1)
    return jnp.tanh(y)


if __name__ == "__main__":
    # Shapes implied by the GAN MNIST generator: z_dim=64 latent, img_dim=784 (28*28).
    B, Z_DIM, IMG_DIM = 8, 64, 784

    key = jax.random.PRNGKey(0)
    k_x, k_p = jax.random.split(key)
    x = jax.random.normal(k_x, (B, Z_DIM), dtype=jnp.float32)
    w1, b1, w2, b2 = init_generator_params(k_p, Z_DIM, IMG_DIM)

    # Weight padding / bf16 cast done ONCE, outside the hot path.
    params = prepare_generator_params(w1, b1, w2, b2)

    out = jax.block_until_ready(generator_forward(x, params))
    ref = reference_forward(x, w1, b1, w2, b2)
    assert out.shape == (B, IMG_DIM)
    assert out.dtype == jnp.bfloat16
    # bf16 store of tanh output: <= ~4e-3 absolute deviation from the f32 ref.
    assert jnp.allclose(out.astype(jnp.float32), ref, atol=1e-2, rtol=1e-2)

    # Ragged batch -> multi-step "parallel" grid (3 tiles of 88 rows for B=260).
    x_big = jax.random.normal(jax.random.PRNGKey(1), (260, Z_DIM), dtype=jnp.float32)
    out_big = jax.block_until_ready(
        generator_forward(x_big, params, block_b=128))
    ref_big = reference_forward(x_big, w1, b1, w2, b2)
    assert out_big.shape == (260, IMG_DIM)
    assert jnp.allclose(out_big.astype(jnp.float32), ref_big, atol=1e-2, rtol=1e-2)

    # Slice-free path: padded, lane-dense (896-wide) slab for lazy consumers.
    out_pad = jax.block_until_ready(
        generator_forward(x_big, params, block_b=128, slice_output=False))
    assert out_pad.shape[1] % 128 == 0
    assert jnp.allclose(out_pad[:260, :IMG_DIM].astype(jnp.float32), ref_big,
                        atol=1e-2, rtol=1e-2)

    print("KERNEL_OK")
</pallas_src>

<mosaic_0001>
module attributes {stable_mosaic.version = 11 : i64} {
  func.func @generator_kernel(%arg0: i32, %arg1: memref<8x64xf32, #tpu.memory_space<vmem>>, %arg2: memref<64x256xbf16, #tpu.memory_space<vmem>>, %arg3: memref<1x256xf32, #tpu.memory_space<vmem>>, %arg4: memref<256x896xbf16, #tpu.memory_space<vmem>>, %arg5: memref<1x896xf32, #tpu.memory_space<vmem>>, %arg6: memref<8x896xbf16, #tpu.memory_space<vmem>>) attributes {dimension_semantics = [#tpu.dimension_semantics<parallel>], iteration_bounds = array<i64: 2>, scalar_prefetch = 0 : i64, scratch_operands = 0 : i64, tpu.core_type = #tpu.core_type<tc>, window_params = [{transform_indices = @transform_0, window_bounds = array<i64: 8, 64>}, {pipeline_mode = #tpu.pipeline_mode<synchronous>, transform_indices = @transform_1, window_bounds = array<i64: 64, 256>}, {pipeline_mode = #tpu.pipeline_mode<synchronous>, transform_indices = @transform_2, window_bounds = array<i64: 1, 256>}, {pipeline_mode = #tpu.pipeline_mode<synchronous>, transform_indices = @transform_3, window_bounds = array<i64: 256, 896>}, {pipeline_mode = #tpu.pipeline_mode<synchronous>, transform_indices = @transform_4, window_bounds = array<i64: 1, 896>}, {transform_indices = @transform_5, window_bounds = array<i64: 8, 896>}]} {
    %c0 = arith.constant 0 : index
    %c0_0 = arith.constant 0 : index
    %0 = vector.load %arg1[%c0, %c0_0] : memref<8x64xf32, #tpu.memory_space<vmem>>, vector<8x64xf32>
    %1 = arith.truncf %0 : vector<8x64xf32> to vector<8x64xbf16>
    %c0_1 = arith.constant 0 : index
    %c0_2 = arith.constant 0 : index
    %2 = vector.load %arg2[%c0_1, %c0_2] : memref<64x256xbf16, #tpu.memory_space<vmem>>, vector<64x256xbf16>
    %cst = arith.constant dense<0.000000e+00> : vector<8x256xf32>
    %3 = tpu.matmul %1, %2, %cst {dimension_numbers = #tpu.dot_dimension_numbers<[1], [0], [0], [1], [0, 0, 1, 1], [], []>} : vector<8x64xbf16>, vector<64x256xbf16>, vector<8x256xf32> -> vector<8x256xf32>
    %c0_3 = arith.constant 0 : index
    %c0_4 = arith.constant 0 : index
    %4 = vector.load %arg3[%c0_3, %c0_4] : memref<1x256xf32, #tpu.memory_space<vmem>>, vector<1x256xf32>
    %5 = vector.broadcast %4 : vector<1x256xf32> to vector<8x256xf32>
    %6 = arith.addf %3, %5 : vector<8x256xf32>
    %cst_5 = arith.constant 0.000000e+00 : f32
    %7 = vector.broadcast %cst_5 : f32 to vector<8x256xf32>
    %8 = arith.cmpf ogt, %6, %7 : vector<8x256xf32>
    %cst_6 = arith.constant 1.000000e-01 : f32
    %9 = vector.broadcast %cst_6 : f32 to vector<8x256xf32>
    %10 = arith.mulf %9, %6 : vector<8x256xf32>
    %11 = arith.select %8, %6, %10 : vector<8x256xi1>, vector<8x256xf32>
    %12 = arith.truncf %11 : vector<8x256xf32> to vector<8x256xbf16>
    %c0_7 = arith.constant 0 : index
    %c0_8 = arith.constant 0 : index
    %13 = vector.load %arg4[%c0_7, %c0_8] : memref<256x896xbf16, #tpu.memory_space<vmem>>, vector<256x896xbf16>
    %cst_9 = arith.constant dense<0.000000e+00> : vector<8x896xf32>
    %14 = tpu.matmul %12, %13, %cst_9 {dimension_numbers = #tpu.dot_dimension_numbers<[1], [0], [0], [1], [0, 0, 1, 1], [], []>} : vector<8x256xbf16>, vector<256x896xbf16>, vector<8x896xf32> -> vector<8x896xf32>
    %c0_10 = arith.constant 0 : index
    %c0_11 = arith.constant 0 : index
    %15 = vector.load %arg5[%c0_10, %c0_11] : memref<1x896xf32, #tpu.memory_space<vmem>>, vector<1x896xf32>
    %16 = vector.broadcast %15 : vector<1x896xf32> to vector<8x896xf32>
    %17 = arith.addf %14, %16 : vector<8x896xf32>
    %18 = math.tanh %17 : vector<8x896xf32>
    %19 = arith.truncf %18 : vector<8x896xf32> to vector<8x896xbf16>
    %c0_12 = arith.constant 0 : index
    %c0_13 = arith.constant 0 : index
    %20 = vector.load %arg6[%c0_12, %c0_13] : memref<8x896xbf16, #tpu.memory_space<vmem>>, vector<8x896xbf16>
    tpu.vector_store %arg6[%c0_12, %c0_13], %19 {strides = array<i32>} : memref<8x896xbf16, #tpu.memory_space<vmem>>, vector<8x896xbf16>,
    return
  }
  func.func @transform_0(%arg0: i32) -> (i32, i32) {
    %c0_i32 = arith.constant 0 : i32
    %c0_i32_0 = arith.constant 0 : i32
    return %arg0, %c0_i32 : i32, i32
  }
  func.func @transform_1(%arg0: i32) -> (i32, i32) {
    %c0_i32 = arith.constant 0 : i32
    %c0_i32_0 = arith.constant 0 : i32
    %c0_i32_1 = arith.constant 0 : i32
    return %c0_i32, %c0_i32_0 : i32, i32
  }
  func.func @transform_2(%arg0: i32) -> (i32, i32) {
    %c0_i32 = arith.constant 0 : i32
    %c0_i32_0 = arith.constant 0 : i32
    %c0_i32_1 = arith.constant 0 : i32
    return %c0_i32, %c0_i32_0 : i32, i32
  }
  func.func @transform_3(%arg0: i32) -> (i32, i32) {
    %c0_i32 = arith.constant 0 : i32
    %c0_i32_0 = arith.constant 0 : i32
    %c0_i32_1 = arith.constant 0 : i32
    return %c0_i32, %c0_i32_0 : i32, i32
  }
  func.func @transform_4(%arg0: i32) -> (i32, i32) {
    %c0_i32 = arith.constant 0 : i32
    %c0_i32_0 = arith.constant 0 : i32
    %c0_i32_1 = arith.constant 0 : i32
    return %c0_i32, %c0_i32_0 : i32, i32
  }
  func.func @transform_5(%arg0: i32) -> (i32, i32) {
    %c0_i32 = arith.constant 0 : i32
    %c0_i32_0 = arith.constant 0 : i32
    return %arg0, %c0_i32 : i32, i32
  }
}

</mosaic_0001>

<bundles_post_ra>
// kernel: tpu_custom_call.1
= control target key start
LH: loop header
LB: loop body
LE: loop exit
PB: predicated region body
PF: predicated region fallthrough
CT: control target
= control target key end

     0   :  { %10 = vsyncpa [#allocation3], 0  ;;  %s2639_s0 = inlined_call_operand.hbm [shape: f32[16,64], index: 0, kind: input, shape index: {}]   ;;  %s2640_s1 = inlined_call_operand.hbm [shape: bf16[64,256], index: 1, kind: input, shape index: {}]   ;;  %s2641_s2 = inlined_call_operand.hbm [shape: f32[1,256], index: 2, kind: input, shape index: {}]   ;;  %s2642_s3 = inlined_call_operand.hbm [shape: bf16[256,896], index: 3, kind: input, shape index: {}]   ;;  %s2643_s4 = inlined_call_operand.hbm [shape: f32[1,896], index: 4, kind: input, shape index: {}]   ;;  %s2644_s5 = inlined_call_operand.hbm [shape: bf16[16,896], index: 5, kind: output, shape index: {}]  }
   0x1   :  { %12 = vsyncpa [#allocation3 + $0x1], 0 }
   0x2   :  { %13 = vsyncpa [#allocation6], 0 }
   0x3   :  { %14 = vsyncpa [#allocation9], 0 }
   0x4   :  { %15 = vsyncpa [#allocation4], 0 }
   0x5   :  { %17 = vsyncpa [#allocation4 + $0x1], 0  ;;  %s2432_s18 = smov 0   ;;  %s2434_s19 = smov 0  }
   0x6   :  { %s2436_s20 = smov 0   ;;  %s2438_s21 = smov 0  }
   0x7 LB: > { %s175_s24 = sshll.u32 %s2640_s1, 4  ;;  %s2456_s25 = sadd.s32 4294967295, %s2392_s21   ;;  %s2392_s21 = sphi %s2438_s21, %s2656_s21   ;;  %s2388_s20 = sphi %s2436_s20, %s2655_s20   ;;  %s2384_s19 = sphi %s2434_s19, %s2654_s19   ;;  %s2380_s18 = sphi %s2432_s18, %s2653_s18   ;;  %s176_s24 = int_to_ptr.hbm [resolvable:$true] %s175_s24 }
   0x8   : > { %p1442_p0 = scmp.ge.s32.totalorder %s2392_s21, 1  ;;  %p44_p1 = scmp.eq.s32.totalorder %s2456_s25, 0 }
   0x9   : > { %p164_p2 = scmp.lt.s32.totalorder %s2392_s21, 3  ;;  %s2394_s27 = smov [#allocation5]  }
   0xa   : > { %s177_s28 = sshll.u32 %s2394_s27, 4  ;;  %s201_s6 = sshll.u32 %s2642_s3, 4  ;;  %s178_s28 = int_to_ptr.vmem [resolvable:$true] %s177_s28  ;;  %s202_s6 = int_to_ptr.hbm [resolvable:$true] %s201_s6 }
   0xb   : > { %p2461_p3 = pnand %p1442_p0, %p164_p2  ;;  %s2395_s8 = smov [#allocation8]  }
   0xc   : > { %s203_s9 = sshll.u32 %s2395_s8, 4  ;;  %s2396_s10 = smov 128   ;;  %s204_s9 = int_to_ptr.vmem [resolvable:$true] %s203_s9 }
   0xd   : > { %p2083_p4 = pneg %p2461_p3  ;;  %s2397_s11 = smov 8  }
   0xe   : > { %s2398_s12 = smov 448   ;;  %s2399_s13 = smov 28  }
   0xf   : > { %p2473_p6 = pnand %p2083_p4, %p44_p1  ;;  %s190_s16 = sshll.u32 %s2641_s2, 4  ;;  %s191_s16 = int_to_ptr.hbm [resolvable:$true] %s190_s16 }
  0x10   : > { %s2400_s17 = smov [#allocation7]   ;;  %s216_s27 = sshll.u32 %s2643_s4, 4  ;;  %s217_s27 = int_to_ptr.hbm [resolvable:$true] %s216_s27 }
  0x11   : > { %2086 = dma.hbm_to_vmem [thread:$0]  (!%p2473_p6), %s176_s24, 1024, %s178_s28, [#allocation6], %s2396_s10, %s2396_s10, %s2397_s11  }
  0x12   : > { %2092 = dma.hbm_to_vmem [thread:$0]  (!%p2473_p6), %s202_s6, 14336, %s204_s9, [#allocation9], %s2398_s12, %s2398_s12, %s2399_s13  }
  0x13   : > { %s192_s22 = sshll.u32 %s2400_s17, 4  ;;  %s2401_s28 = smov [#allocation10]   ;;  %s193_s22 = int_to_ptr.vmem [resolvable:$true] %s192_s22 }
  0x14   : > { %2089 = dma.hbm_to_vmem [thread:$0]  (!%p2473_p6), %s191_s16, 32, %s193_s22, [#allocation6]  }
  0x15   : > { %s218_s29 = sshll.u32 %s2401_s28, 4  ;;  %s1441_s30 = sadd.s32 4294967294, %s2392_s21   ;;  %s219_s29 = int_to_ptr.vmem [resolvable:$true] %s218_s29 }
  0x16   : > { %2095 = dma.hbm_to_vmem [thread:$0]  (!%p2473_p6), %s217_s27, 112, %s219_s29, [#allocation9]  }
  0x17   : > { %s2493_s6 = sadd.s32 1, %s2392_s21   ;;  %s30_s9 = sadd.s32 1, %s2388_s20 }
  0x18   : > { %s27_s8 = ssub.s32 %s2392_s21, %s2493_s6  ;;  %p37_p8 = scmp.ne.s32.totalorder %s2388_s20, %s2384_s19 }
  0x19   : > { %p28_p7 = scmp.eq.s32.totalorder %s27_s8, 0  ;;  %p38_p9 = scmp.eq.s32.totalorder %s2392_s21, 0 }
  0x1a   : > { %p43_p10 = scmp.ne.s32.totalorder %s2384_s19, %s2380_s18  ;;  %p151_p13 = scmp.eq.s32.totalorder %s2456_s25, 1 }
  0x1b   : > { %s2504_s10 = scalar_select %p28_p7, %s2388_s20, %s30_s9  }
  0x1c   : > { %p2506_p11 = por %p38_p9, %p37_p8  ;;  %p2512_p12 = por %p44_p1, %p43_p10 }
  0x1d   : > { %p157_p0 = scmp.eq.s32.totalorder %s1441_s30, 1  ;;  %p2108_p2 = scmp.lt.s32.totalorder %s2392_s21, 2 }
  0x1e   : > { %s229_s12 = sand.u32 1, %s2388_s20   ;;  %p2519_p4 = por %p151_p13, %p37_p8 }
  0x1f   : > { %p2523_p6 = por %p157_p0, %p43_p10  ;;  %s1448_s15 = sshll.u32 %s229_s12, 3 }
  0x20   : > { %s1449_s16 = sshll.u32 %s2392_s21, 3  ;;  %s233_s24 = scalar_lea.vmem [#allocation2], %s1448_s15 }
  0x21   : > { %s237_s23 = scalar_lea.hbm %s2639_s0, %s1449_s16  ;;  %s241_s27 = sshll.u32 %s233_s24, 4  ;;  %s242_s27 = int_to_ptr.vmem [resolvable:$true] %s241_s27 }
  0x22   : > { %s239_s28 = sshll.u32 %s237_s23, 4  ;;  %p2533_p7 = pnand %p2108_p2, %p2506_p11  ;;  %s240_s28 = int_to_ptr.hbm [resolvable:$true] %s239_s28 }
  0x23   : > { %s230_s30 = scalar_lea.sflag [#allocation3], %s229_s12  ;;  %s2288_s8 = sshra.s32 %s240_s28, 4  ;;  %s2289_s8 = int_to_ptr.hbm [resolvable:$true] %s2288_s8 }
  0x24   : > { %s2290_s9 = scalar_lea.hbm %s2289_s8, 8  ;;  %p2292_p9 = pneg %p2533_p7 }
  0x25   : > { %p2291_p8 = scmp.ne.s32.totalorder %s2289_s8, %s2290_s9  ;;  %s2295_s17 = scalar_lea.hbm %s2639_s0, 16 }
  0x26   : > { %p2296_p11 = scmp.lt.s32.totalorder %s2289_s8, %s2639_s0  ;;  %p2297_p0 = scmp.lt.s32.totalorder %s2295_s17, %s2290_s9 }
  0x27   : > { %p2293_p10 = pnand %p2292_p9, %p2291_p8 }
  0x28   : > { %p2298_p2 = por %p2297_p0, %p2296_p11 }
  0x29   : > { %p2294_p13 = pneg %p2293_p10 }
  0x2b   : > { %p2299_p5 = pnand %p2298_p2, %p2294_p13 }
  0x2d   : > { %2302 = shalt.err (!%p2299_p5)
}
  0x2e   : > { %2099 = dma.hbm_to_vmem [thread:$0]  (!%p2533_p7), %s240_s28, 128, %s242_s27, %s230_s30  }
  0x2f   : > { %250 = sbr.rel (%p2461_p3) target bundleno = 421 (0x1a5), region = 40  ;;  %s2550_s12 = sand.u32 (!%p2461_p3), 1, %s2384_s19  }
  0x30   : > { %s1451_s23 = sshll.u32 (!%p2461_p3), %s2550_s12, 3  ;;  %s253_s24 = scalar_lea.sflag (!%p2461_p3), [#allocation3], %s2550_s12 }
  0x31   : > { %s2554_s15 = scalar_lea.vmem (!%p2461_p3), [#allocation2], %s1451_s23 }
  0x34   : > { %2363 = dma.done.wait (%p2512_p12), %s253_s24, 128  }
  0x35   : > { %2365 = vsyncadd (%p2512_p12), %s253_s24, 4294967168 }
  0x36   : > { %2367 = dma.done.wait (%p44_p1), [#allocation6], 1056  }
  0x37   : > { %2369 = vsyncadd (%p44_p1), [#allocation6], 4294966240 }
  0x38   : > { %2371 = dma.done.wait (%p44_p1), [#allocation9], 14448  }
  0x39   : > { %2373 = vsyncadd (%p44_p1), [#allocation9], 4294952848  ;;  %v1482_v0 = vld [vmem:[#allocation5 + $0x30] sm:$0xf]  ;;  %v1948_v1 = vld [vmem:[#allocation5 + $0x34] sm:$0xf0] }
  0x3a   : > { %v1947_v2 = vld [vmem:[#allocation5 + $0x34] sm:$0xf]  ;;  %v1483_v3 = vor.u32 %v1948_v1, %v1482_v0  ;;  %v1484_v4 = vld [vmem:[#allocation5 + $0x38] sm:$0xf0]  ;;  %v1474_v5 = vld [vmem:[#allocation5 + $0x20] sm:$0xf] }
  0x3b   : > { %v1946_v6 = vld [vmem:[#allocation5 + $0x24] sm:$0xf0]  ;;  %v1487_v7 = vor.u32 %v1947_v2, %v1484_v4  ;;  %v1945_v8 = vld [vmem:[#allocation5 + $0x24] sm:$0xf]  ;;  %v1476_v9 = vld [vmem:[#allocation5 + $0x28] sm:$0xf0] }
  0x3c   : > { %369 = vmatpush.bf16.msra.mxu0 %v1483_v3  ;;  %v1475_v10 = vor.u32 %v1946_v6, %v1474_v5  ;;  %v1479_v11 = vor.u32 %v1945_v8, %v1476_v9  ;;  %v1466_v12 = vld [vmem:[#allocation5 + $0x10] sm:$0xf]  ;;  %v1944_v13 = vld [vmem:[#allocation5 + $0x14] sm:$0xf0]  ;;  %v1943_v14 = vld [vmem:[#allocation5 + $0x14] sm:$0xf] }
  0x3d   : > { %382 = vmatpush.bf16.msra.mxu1 %v1487_v7  ;;  %v1468_v15 = vld [vmem:[#allocation5 + $0x18] sm:$0xf0]  ;;  %v1688_v16 = vld [vmem:[#allocation8 + $0x188] sm:$0xf]  ;;  %v1458_v17 = vld [vmem:[#allocation5] sm:$0xf]  ;;  %v1467_v21 = vor.u32 %v1944_v13, %v1466_v12 }
  0x3e   : > { %v2001_v18 = vld [vmem:[#allocation8 + $0x1a0] sm:$0xf0]  ;;  %v1912_v19 = vld [vmem:[#allocation8 + $0x348] sm:$0xf]  ;;  %v1471_v27 = vor.u32 %v1943_v14, %v1468_v15  ;;  %v1998_v28 = vld [vmem:[#allocation8 + $0x18c] sm:$0xf] }
  0x3f   : > { %v2057_v20 = vld [vmem:[#allocation8 + $0x360] sm:$0xf0]  ;;  %v1460_v24 = vld [vmem:[#allocation5 + $0x8] sm:$0xf0]  ;;  %v1689_v25 = vor.u32 %v2001_v18, %v1688_v16  ;;  %v1660_v29 = vld [vmem:[#allocation8 + $0x150] sm:$0xf] }
  0x40   : > { %370 = vmatpush.bf16.msra.mxu0 %v1475_v10  ;;  %v1942_v22 = vld [vmem:[#allocation5 + $0x4] sm:$0xf0]  ;;  %v1941_v23 = vld [vmem:[#allocation5 + $0x4] sm:$0xf]  ;;  %v1913_v26 = vor.u32 %v2057_v20, %v1912_v19  ;;  %v1994_v30 = vld [vmem:[#allocation8 + $0x168] sm:$0xf0] }
  0x41   : > { %383 = vmatpush.bf16.msra.mxu1 %v1479_v11  ;;  %1119 = vmatpush.bf16.msra.mxu2 %v1689_v25  ;;  %v1690_v31 = vld [vmem:[#allocation8 + $0x1a4] sm:$0xf0]  ;;  %v1661_v32 = vor.u32 %v1994_v30, %v1660_v29  ;;  %v1884_v33 = vld [vmem:[#allocation8 + $0x310] sm:$0xf]  ;;  %v2050_v34 = vld [vmem:[#allocation8 + $0x328] sm:$0xf0]  ;;  %v1459_v39 = vor.u32 %v1942_v22, %v1458_v17  ;;  %v1463_v43 = vor.u32 %v1941_v23, %v1460_v24 }
  0x42   : > { %1132 = vmatpush.bf16.msra.mxu3 %v1913_v26  ;;  %v305_v35 = vld [vmem:[%s2554_s15] sm:$0xff]  ;;  %v1914_v37 = vld [vmem:[#allocation8 + $0x364] sm:$0xf0]  ;;  %v1885_v38 = vor.u32 %v2050_v34, %v1884_v33  ;;  %v1693_v44 = vor.u32 %v1998_v28, %v1690_v31  ;;  %v1604_v54 = vld [vmem:[#allocation8 + $0xe0] sm:$0xf]  ;;  %vm361_vm0 = vcmask 523264  }
  0x43   : > { %v2054_v36 = vld [vmem:[#allocation8 + $0x34c] sm:$0xf]  ;;  %v1632_v40 = vld [vmem:[#allocation8 + $0x118] sm:$0xf]  ;;  %v1987_v41 = vld [vmem:[#allocation8 + $0x130] sm:$0xf0]  ;;  %v306_v51 = vpack.c.bf16 %v305_v35, %v305_v35 }
  0x44   : > { %371 = vmatpush.bf16.msra.mxu0 %v1467_v21  ;;  %v1856_v42 = vld [vmem:[#allocation8 + $0x2d8] sm:$0xf]  ;;  %v2043_v45 = vld [vmem:[#allocation8 + $0x2f0] sm:$0xf0]  ;;  %v1917_v46 = vor.u32 %v2054_v36, %v1914_v37  ;;  %v1662_v48 = vld [vmem:[#allocation8 + $0x16c] sm:$0xf0]  ;;  %v1633_v50 = vor.u32 %v1987_v41, %v1632_v40 }
  0x45   : > { %384 = vmatpush.bf16.msra.mxu1 %v1471_v27  ;;  %1120 = vmatpush.bf16.msra.mxu2 %v1661_v32  ;;  %v1991_v47 = vld [vmem:[#allocation8 + $0x154] sm:$0xf]  ;;  %v1886_v52 = vld [vmem:[#allocation8 + $0x32c] sm:$0xf0]  ;;  %v1857_v53 = vor.u32 %v2043_v45, %v1856_v42  ;;  %v1980_v55 = vld [vmem:[#allocation8 + $0xf8] sm:$0xf0] }
  0x46   : > { %1133 = vmatpush.bf16.msra.mxu3 %v1885_v38  ;;  %v2047_v49 = vld [vmem:[#allocation8 + $0x314] sm:$0xf]  ;;  %v1828_v56 = vld [vmem:[#allocation8 + $0x2a0] sm:$0xf]  ;;  %v2036_v57 = vld [vmem:[#allocation8 + $0x2b8] sm:$0xf0]  ;;  %v1665_v58 = vor.u32 %v1991_v47, %v1662_v48  ;;  %v1605_v63 = vor.u32 %v1980_v55, %v1604_v54 }
  0x47   : > { %v1889_v59 = vor.u32 %v2047_v49, %v1886_v52  ;;  %v1984_v60 = vld [vmem:[#allocation8 + $0x11c] sm:$0xf]  ;;  %v1634_v61 = vld [vmem:[#allocation8 + $0x134] sm:$0xf0]  ;;  %v1829_v1 = vor.u32 %v2036_v57, %v1828_v56  ;;  %v1576_v2 = vld [vmem:[#allocation8 + $0xa8] sm:$0xf] }
  0x48   : > { %372 = vmatpush.bf16.msra.mxu0 %v1459_v39  ;;  %v2040_v62 = vld [vmem:[#allocation8 + $0x2dc] sm:$0xf]  ;;  %v1858_v0 = vld [vmem:[#allocation8 + $0x2f4] sm:$0xf0]  ;;  %v1973_v3 = vld [vmem:[#allocation8 + $0xc0] sm:$0xf0]  ;;  %v1637_v6 = vor.u32 %v1984_v60, %v1634_v61 }
  0x49   : > { %385 = vmatpush.bf16.msra.mxu1 %v1463_v43  ;;  %1121 = vmatpush.bf16.msra.mxu2 %v1633_v50  ;;  %v1800_v4 = vld [vmem:[#allocation8 + $0x268] sm:$0xf]  ;;  %v2029_v5 = vld [vmem:[#allocation8 + $0x280] sm:$0xf0]  ;;  %v1861_v7 = vor.u32 %v2040_v62, %v1858_v0  ;;  %v1606_v9 = vld [vmem:[#allocation8 + $0xfc] sm:$0xf0]  ;;  %v1577_v11 = vor.u32 %v1973_v3, %v1576_v2 }
  0x4a   : > { %1134 = vmatpush.bf16.msra.mxu3 %v1857_v53  ;;  %v1977_v8 = vld [vmem:[#allocation8 + $0xe4] sm:$0xf]  ;;  %v1830_v12 = vld [vmem:[#allocation8 + $0x2bc] sm:$0xf0]  ;;  %v1801_v13 = vor.u32 %v2029_v5, %v1800_v4  ;;  %v1548_v14 = vld [vmem:[#allocation8 + $0x70] sm:$0xf] }
  0x4b   : > { %1488 = vmatmul.msk.bf16.vlgmr.msra.gmra.mxu0 %vm361_vm0, %v306_v51  ;;  %v2033_v10 = vld [vmem:[#allocation8 + $0x2a4] sm:$0xf]  ;;  %v1966_v15 = vld [vmem:[#allocation8 + $0x88] sm:$0xf0]  ;;  %v1772_v16 = vld [vmem:[#allocation8 + $0x230] sm:$0xf]  ;;  %v1609_v18 = vor.u32 %v1977_v8, %v1606_v9 }
  0x4c   : > { %1145 = vmatpush.bf16.msrb.mxu0 %v1693_v44  ;;  %1489 = vmatmul.msk.bf16.vlgmr.msra.gmra.mxu1 %vm361_vm0, %v306_v51  ;;  %v2022_v17 = vld [vmem:[#allocation8 + $0x248] sm:$0xf0]  ;;  %v1833_v19 = vor.u32 %v2033_v10, %v1830_v12  ;;  %v1578_v21 = vld [vmem:[#allocation8 + $0xc4] sm:$0xf0]  ;;  %v1549_v23 = vor.u32 %v1966_v15, %v1548_v14  ;;  %v1520_v26 = vld [vmem:[#allocation8 + $0x38] sm:$0xf] }
  0x4d   : > { %1158 = vmatpush.bf16.msrb.mxu1 %v1917_v46  ;;  %1122 = vmatpush.bf16.msra.mxu2 %v1605_v63  ;;  %v1970_v20 = vld [vmem:[#allocation8 + $0xac] sm:$0xf]  ;;  %v1802_v24 = vld [vmem:[#allocation8 + $0x284] sm:$0xf0]  ;;  %v1773_v25 = vor.u32 %v2022_v17, %v1772_v16  ;;  %v1959_v27 = vld [vmem:[#allocation8 + $0x50] sm:$0xf0] }
  0x4e   : > { %1135 = vmatpush.bf16.msra.mxu3 %v1829_v1  ;;  %v2026_v22 = vld [vmem:[#allocation8 + $0x26c] sm:$0xf]  ;;  %v1744_v28 = vld [vmem:[#allocation8 + $0x1f8] sm:$0xf]  ;;  %v2015_v29 = vld [vmem:[#allocation8 + $0x210] sm:$0xf0]  ;;  %v1581_v30 = vor.u32 %v1970_v20, %v1578_v21  ;;  %v1521_v36 = vor.u32 %v1959_v27, %v1520_v26 }
  0x4f   : > { %v1963_v31 = vld [vmem:[#allocation8 + $0x74] sm:$0xf]  ;;  %v1805_v32 = vor.u32 %v2026_v22, %v1802_v24  ;;  %v1550_v33 = vld [vmem:[#allocation8 + $0x8c] sm:$0xf0]  ;;  %v1745_v37 = vor.u32 %v2015_v29, %v1744_v28  ;;  %v1492_v38 = vld [vmem:[#allocation8] sm:$0xf] }
  0x50   : > { %1146 = vmatpush.bf16.msrb.mxu0 %v1665_v58  ;;  %v2019_v34 = vld [vmem:[#allocation8 + $0x234] sm:$0xf]  ;;  %v1774_v35 = vld [vmem:[#allocation8 + $0x24c] sm:$0xf0]  ;;  %v1952_v39 = vld [vmem:[#allocation8 + $0x18] sm:$0xf0]  ;;  %v1553_v44 = vor.u32 %v1963_v31, %v1550_v33 }
  0x51   : > { %1159 = vmatpush.bf16.msrb.mxu1 %v1889_v59  ;;  %1123 = vmatpush.bf16.msra.mxu2 %v1577_v11  ;;  %v1716_v40 = vld [vmem:[#allocation8 + $0x1c0] sm:$0xf]  ;;  %v2008_v41 = vld [vmem:[#allocation8 + $0x1d8] sm:$0xf0]  ;;  %v1696_v42 = vld [vmem:[#allocation8 + $0x190] sm:$0xf]  ;;  %v1777_v47 = vor.u32 %v2019_v34, %v1774_v35  ;;  %v1493_v50 = vor.u32 %v1952_v39, %v1492_v38 }
  0x52   : > { %1136 = vmatpush.bf16.msra.mxu3 %v1801_v13  ;;  %v2002_v43 = vld [vmem:[#allocation8 + $0x1a8] sm:$0xf0]  ;;  %v1920_v45 = vld [vmem:[#allocation8 + $0x350] sm:$0xf]  ;;  %v1956_v48 = vld [vmem:[#allocation8 + $0x3c] sm:$0xf]  ;;  %v1717_v53 = vor.u32 %v2008_v41, %v1716_v40 }
  0x53   : > { %v2058_v46 = vld [vmem:[#allocation8 + $0x368] sm:$0xf0]  ;;  %v1522_v49 = vld [vmem:[#allocation8 + $0x54] sm:$0xf0]  ;;  %v2012_v51 = vld [vmem:[#allocation8 + $0x1fc] sm:$0xf]  ;;  %v1697_v54 = vor.u32 %v2002_v43, %v1696_v42 }
  0x54   : > { %1147 = vmatpush.bf16.msrb.mxu0 %v1637_v6  ;;  %v1746_v52 = vld [vmem:[#allocation8 + $0x214] sm:$0xf0]  ;;  %v1921_v55 = vor.u32 %v2058_v46, %v1920_v45  ;;  %v1995_v57 = vld [vmem:[#allocation8 + $0x170] sm:$0xf0]  ;;  %v1525_v58 = vor.u32 %v1956_v48, %v1522_v49  ;;  %v1949_v59 = vld [vmem:[#allocation8 + $0x4] sm:$0xf] }
  0x55   : > { %1160 = vmatpush.bf16.msrb.mxu1 %v1861_v7  ;;  %1124 = vmatpush.bf16.msra.mxu2 %v1549_v23  ;;  %v1668_v56 = vld [vmem:[#allocation8 + $0x158] sm:$0xf]  ;;  %v2051_v61 = vld [vmem:[#allocation8 + $0x330] sm:$0xf0]  ;;  %v1749_v62 = vor.u32 %v2012_v51, %v1746_v52  ;;  %v1494_v63 = vld [vmem:[#allocation8 + $0x1c] sm:$0xf0] }
  0x56   : > { %1137 = vmatpush.bf16.msra.mxu3 %v1773_v25  ;;  %v1892_v60 = vld [vmem:[#allocation8 + $0x318] sm:$0xf]  ;;  %v2005_v0 = vld [vmem:[#allocation8 + $0x1c4] sm:$0xf]  ;;  %v1718_v1 = vld [vmem:[#allocation8 + $0x1dc] sm:$0xf0]  ;;  %v1669_v5 = vor.u32 %v1995_v57, %v1668_v56  ;;  %v1497_v10 = vor.u32 %v1949_v59, %v1494_v63 }
  0x57   : > { %v1999_v2 = vld [vmem:[#allocation8 + $0x194] sm:$0xf]  ;;  %v1698_v3 = vld [vmem:[#allocation8 + $0x1ac] sm:$0xf0]  ;;  %v1893_v7 = vor.u32 %v2051_v61, %v1892_v60  ;;  %v1640_v8 = vld [vmem:[#allocation8 + $0x120] sm:$0xf]  ;;  %v1721_v13 = vor.u32 %v2005_v0, %v1718_v1 }
  0x58   : > { %1148 = vmatpush.bf16.msrb.mxu0 %v1609_v18  ;;  %v2055_v4 = vld [vmem:[#allocation8 + $0x354] sm:$0xf]  ;;  %v1922_v6 = vld [vmem:[#allocation8 + $0x36c] sm:$0xf0]  ;;  %v1988_v9 = vld [vmem:[#allocation8 + $0x138] sm:$0xf0]  ;;  %v1701_v14 = vor.u32 %v1999_v2, %v1698_v3 }
  0x59   : > { %1161 = vmatpush.bf16.msrb.mxu1 %v1833_v19  ;;  %1125 = vmatpush.bf16.msra.mxu2 %v1521_v36  ;;  %v1864_v11 = vld [vmem:[#allocation8 + $0x2e0] sm:$0xf]  ;;  %v2044_v12 = vld [vmem:[#allocation8 + $0x2f8] sm:$0xf0]  ;;  %v1925_v15 = vor.u32 %v2055_v4, %v1922_v6  ;;  %v1670_v17 = vld [vmem:[#allocation8 + $0x174] sm:$0xf0]  ;;  %v1641_v19 = vor.u32 %v1988_v9, %v1640_v8 }
  0x5a   : > { %1138 = vmatpush.bf16.msra.mxu3 %v1745_v37  ;;  %v1992_v16 = vld [vmem:[#allocation8 + $0x15c] sm:$0xf]  ;;  %v1894_v20 = vld [vmem:[#allocation8 + $0x334] sm:$0xf0]  ;;  %v1865_v21 = vor.u32 %v2044_v12, %v1864_v11  ;;  %v1612_v22 = vld [vmem:[#allocation8 + $0xe8] sm:$0xf] }
  0x5b   : > { %v2048_v18 = vld [vmem:[#allocation8 + $0x31c] sm:$0xf]  ;;  %v1981_v23 = vld [vmem:[#allocation8 + $0x100] sm:$0xf0]  ;;  %v1836_v24 = vld [vmem:[#allocation8 + $0x2a8] sm:$0xf]  ;;  %v1673_v26 = vor.u32 %v1992_v16, %v1670_v17 }
  0x5c   : > { %1149 = vmatpush.bf16.msrb.mxu0 %v1581_v30  ;;  %v2037_v25 = vld [vmem:[#allocation8 + $0x2c0] sm:$0xf0]  ;;  %v1897_v27 = vor.u32 %v2048_v18, %v1894_v20  ;;  %v1642_v29 = vld [vmem:[#allocation8 + $0x13c] sm:$0xf0]  ;;  %v1613_v31 = vor.u32 %v1981_v23, %v1612_v22  ;;  %v1584_v34 = vld [vmem:[#allocation8 + $0xb0] sm:$0xf] }
  0x5d   : > { %1162 = vmatpush.bf16.msrb.mxu1 %v1805_v32  ;;  %1126 = vmatpush.bf16.msra.mxu2 %v1493_v50  ;;  %v1985_v28 = vld [vmem:[#allocation8 + $0x124] sm:$0xf]  ;;  %v1866_v32 = vld [vmem:[#allocation8 + $0x2fc] sm:$0xf0]  ;;  %v1837_v33 = vor.u32 %v2037_v25, %v1836_v24  ;;  %v1974_v35 = vld [vmem:[#allocation8 + $0xc8] sm:$0xf0] }
  0x5e   : > { %1139 = vmatpush.bf16.msra.mxu3 %v1717_v53  ;;  %v2041_v30 = vld [vmem:[#allocation8 + $0x2e4] sm:$0xf]  ;;  %v1808_v36 = vld [vmem:[#allocation8 + $0x270] sm:$0xf]  ;;  %v2030_v37 = vld [vmem:[#allocation8 + $0x288] sm:$0xf0]  ;;  %v1645_v38 = vor.u32 %v1985_v28, %v1642_v29  ;;  %v1585_v43 = vor.u32 %v1974_v35, %v1584_v34 }
  0x5f   : > { %v1869_v39 = vor.u32 %v2041_v30, %v1866_v32  ;;  %v1978_v40 = vld [vmem:[#allocation8 + $0xec] sm:$0xf]  ;;  %v1614_v41 = vld [vmem:[#allocation8 + $0x104] sm:$0xf0]  ;;  %v1809_v45 = vor.u32 %v2030_v37, %v1808_v36  ;;  %v1556_v46 = vld [vmem:[#allocation8 + $0x78] sm:$0xf] }
  0x60   : > { %1150 = vmatpush.bf16.msrb.mxu0 %v1553_v44  ;;  %v2034_v42 = vld [vmem:[#allocation8 + $0x2ac] sm:$0xf]  ;;  %v1838_v44 = vld [vmem:[#allocation8 + $0x2c4] sm:$0xf0]  ;;  %v1780_v48 = vld [vmem:[#allocation8 + $0x238] sm:$0xf]  ;;  %v1617_v50 = vor.u32 %v1978_v40, %v1614_v41 }
  0x61   : > { %1163 = vmatpush.bf16.msrb.mxu1 %v1777_v47  ;;  %1171 = vmatpush.bf16.msrb.mxu2 %v1697_v54  ;;  %v1967_v47 = vld [vmem:[#allocation8 + $0x90] sm:$0xf0]  ;;  %v1841_v51 = vor.u32 %v2034_v42, %v1838_v44  ;;  %v1586_v53 = vld [vmem:[#allocation8 + $0xcc] sm:$0xf0]  ;;  %v1964_v60 = vld [vmem:[#allocation8 + $0x7c] sm:$0xf] }
  0x62   : > { %1184 = vmatpush.bf16.msrb.mxu3 %v1921_v55  ;;  %v2023_v49 = vld [vmem:[#allocation8 + $0x250] sm:$0xf0]  ;;  %v1557_v54 = vor.u32 %v1967_v47, %v1556_v46  ;;  %v1810_v56 = vld [vmem:[#allocation8 + $0x28c] sm:$0xf0]  ;;  %v1558_v61 = vld [vmem:[#allocation8 + $0x94] sm:$0xf0] }
  0x63   : > { %v1971_v52 = vld [vmem:[#allocation8 + $0xb4] sm:$0xf]  ;;  %v1781_v57 = vor.u32 %v2023_v49, %v1780_v48  ;;  %v1561_v63 = vor.u32 %v1964_v60, %v1558_v61  ;;  %v1782_v0 = vld [vmem:[#allocation8 + $0x254] sm:$0xf0]  ;;  %v1528_v2 = vld [vmem:[#allocation8 + $0x40] sm:$0xf] }
  0x64   : > { %1151 = vmatpush.bf16.msrb.mxu0 %v1525_v58  ;;  %v2027_v55 = vld [vmem:[#allocation8 + $0x274] sm:$0xf]  ;;  %v1589_v58 = vor.u32 %v1971_v52, %v1586_v53  ;;  %v1960_v3 = vld [vmem:[#allocation8 + $0x58] sm:$0xf0]  ;;  %v1752_v4 = vld [vmem:[#allocation8 + $0x200] sm:$0xf] }
  0x65   : > { %1164 = vmatpush.bf16.msrb.mxu1 %v1749_v62  ;;  %1172 = vmatpush.bf16.msrb.mxu2 %v1669_v5  ;;  %v1813_v59 = vor.u32 %v2027_v55, %v1810_v56  ;;  %v2020_v62 = vld [vmem:[#allocation8 + $0x23c] sm:$0xf]  ;;  %v1529_v5 = vor.u32 %v1960_v3, %v1528_v2  ;;  %v1530_v8 = vld [vmem:[#allocation8 + $0x5c] sm:$0xf0]  ;;  %v2013_v11 = vld [vmem:[#allocation8 + $0x204] sm:$0xf] }
  0x66   : > { %1185 = vmatpush.bf16.msrb.mxu3 %v1893_v7  ;;  %v1785_v1 = vor.u32 %v2020_v62, %v1782_v0  ;;  %v2016_v6 = vld [vmem:[#allocation8 + $0x218] sm:$0xf0]  ;;  %v1957_v7 = vld [vmem:[#allocation8 + $0x44] sm:$0xf]  ;;  %v1754_v12 = vld [vmem:[#allocation8 + $0x21c] sm:$0xf0] }
  0x67   : > { %v1753_v9 = vor.u32 %v2016_v6, %v1752_v4  ;;  %v1724_v16 = vld [vmem:[#allocation8 + $0x1c8] sm:$0xf]  ;;  %v2009_v18 = vld [vmem:[#allocation8 + $0x1e0] sm:$0xf0]  ;;  %v2006_v23 = vld [vmem:[#allocation8 + $0x1cc] sm:$0xf] }
  0x68   : > { %1152 = vmatpush.bf16.msrb.mxu0 %v1497_v10  ;;  %v1533_v10 = vor.u32 %v1957_v7, %v1530_v8  ;;  %v1502_v20 = vld [vmem:[#allocation8 + $0x24] sm:$0xf0]  ;;  %v1704_v32 = vld [vmem:[#allocation8 + $0x198] sm:$0xf]  ;;  %v2059_v36 = vld [vmem:[#allocation8 + $0x370] sm:$0xf0] }
  0x69   : > { %1165 = vmatpush.bf16.msrb.mxu1 %v1721_v13  ;;  %1173 = vmatpush.bf16.msrb.mxu2 %v1641_v19  ;;  %v1757_v13 = vor.u32 %v2013_v11, %v1754_v12  ;;  %v1950_v19 = vld [vmem:[#allocation8 + $0xc] sm:$0xf]  ;;  %v1726_v24 = vld [vmem:[#allocation8 + $0x1e4] sm:$0xf0]  ;;  %v1928_v34 = vld [vmem:[#allocation8 + $0x358] sm:$0xf] }
  0x6a   : > { %1186 = vmatpush.bf16.msrb.mxu3 %v1865_v21  ;;  %v1725_v21 = vor.u32 %v2009_v18, %v1724_v16  ;;  %v1505_v22 = vor.u32 %v1950_v19, %v1502_v20  ;;  %v1729_v25 = vor.u32 %v2006_v23, %v1726_v24  ;;  %v2000_v37 = vld [vmem:[#allocation8 + $0x19c] sm:$0xf]  ;;  %v1930_v42 = vld [vmem:[#allocation8 + $0x374] sm:$0xf0]  ;;  %v1929_v47 = vor.u32 %v2059_v36, %v1928_v34  ;;  %v1676_v48 = vld [vmem:[#allocation8 + $0x160] sm:$0xf] }
  0x6b   : > { %v2056_v40 = vld [vmem:[#allocation8 + $0x35c] sm:$0xf]  ;;  %v1900_v53 = vld [vmem:[#allocation8 + $0x320] sm:$0xf]  ;;  %v1993_v55 = vld [vmem:[#allocation8 + $0x164] sm:$0xf] }
  0x6c   : > { %1197 = vmatpush.bf16.msra.mxu0 %v1701_v14  ;;  %v1500_v14 = vld [vmem:[#allocation8 + $0x8] sm:$0xf]  ;;  %v1996_v49 = vld [vmem:[#allocation8 + $0x178] sm:$0xf0]  ;;  %v1933_v52 = vor.u32 %v2056_v40, %v1930_v42  ;;  %v1989_v0 = vld [vmem:[#allocation8 + $0x140] sm:$0xf0] }
  0x6d   : > { %1210 = vmatpush.bf16.msra.mxu1 %v1925_v15  ;;  %1174 = vmatpush.bf16.msrb.mxu2 %v1613_v31  ;;  %v1953_v15 = vld [vmem:[#allocation8 + $0x20] sm:$0xf0]  ;;  %v1677_v61 = vor.u32 %v1996_v49, %v1676_v48  ;;  %v1872_v3 = vld [vmem:[#allocation8 + $0x2e8] sm:$0xf]  ;;  %v2042_v7 = vld [vmem:[#allocation8 + $0x2ec] sm:$0xf] }
  0x6e   : > { %1187 = vmatpush.bf16.msrb.mxu3 %v1837_v33  ;;  %v1501_v17 = vor.u32 %v1953_v15, %v1500_v14  ;;  %v2003_v33 = vld [vmem:[#allocation8 + $0x1b0] sm:$0xf0]  ;;  %v2045_v4 = vld [vmem:[#allocation8 + $0x300] sm:$0xf0]  ;;  %v1650_v6 = vld [vmem:[#allocation8 + $0x144] sm:$0xf0] }
  0x6f   : > { %v1705_v46 = vor.u32 %v2003_v33, %v1704_v32  ;;  %v1874_v8 = vld [vmem:[#allocation8 + $0x304] sm:$0xf0]  ;;  %v1620_v11 = vld [vmem:[#allocation8 + $0xf0] sm:$0xf]  ;;  %v1982_v12 = vld [vmem:[#allocation8 + $0x108] sm:$0xf0] }
  0x70   : > { %1198 = vmatpush.bf16.msra.mxu0 %v1673_v26  ;;  %v315_v26 = vld [vmem:[#allocation7] sm:$0x3]  ;;  %v1877_v14 = vor.u32 %v2042_v7, %v1874_v8  ;;  %v1844_v15 = vld [vmem:[#allocation8 + $0x2b0] sm:$0xf]  ;;  %v2038_v16 = vld [vmem:[#allocation8 + $0x2c8] sm:$0xf0] }
  0x71   : > { %1211 = vmatpush.bf16.msra.mxu1 %v1897_v27  ;;  %1175 = vmatpush.bf16.msrb.mxu2 %v1585_v43  ;;  %v317_v27 = vperm.slane %v315_v26, 0  ;;  %v318_v28 = vperm.slane %v315_v26, 1  ;;  %v1622_v18 = vld [vmem:[#allocation8 + $0x10c] sm:$0xf0]  ;;  %v2035_v19 = vld [vmem:[#allocation8 + $0x2b4] sm:$0xf] }
  0x72   : > { %1188 = vmatpush.bf16.msrb.mxu3 %v1809_v45  ;;  %v1846_v20 = vld [vmem:[#allocation8 + $0x2cc] sm:$0xf0]  ;;  %v1592_v23 = vld [vmem:[#allocation8 + $0xb8] sm:$0xf]  ;;  %v1975_v24 = vld [vmem:[#allocation8 + $0xd0] sm:$0xf0] }
  0x73   : > { %v1849_v26 = vor.u32 %v2035_v19, %v1846_v20  ;;  %v1818_v32 = vld [vmem:[#allocation8 + $0x294] sm:$0xf0]  ;;  %v1593_v33 = vor.u32 %v1975_v24, %v1592_v23  ;;  %v1968_v36 = vld [vmem:[#allocation8 + $0x98] sm:$0xf0]  ;;  %v1566_v42 = vld [vmem:[#allocation8 + $0x9c] sm:$0xf0] }
  0x74   : > { %1199 = vmatpush.bf16.msra.mxu0 %v1645_v38  ;;  %v1706_v38 = vld [vmem:[#allocation8 + $0x1b4] sm:$0xf0]  ;;  %v2024_v40 = vld [vmem:[#allocation8 + $0x258] sm:$0xf0]  ;;  %v1536_v48 = vld [vmem:[#allocation8 + $0x48] sm:$0xf] }
  0x75   : > { %1212 = vmatpush.bf16.msra.mxu1 %v1869_v39  ;;  %1176 = vmatpush.bf16.msrb.mxu2 %v1557_v54  ;;  %v2052_v54 = vld [vmem:[#allocation8 + $0x338] sm:$0xf0]  ;;  %v1961_v49 = vld [vmem:[#allocation8 + $0x60] sm:$0xf0]  ;;  %v1712_v7 = vld [vmem:[#allocation8 + $0x1a0] sm:$0xf] }
  0x76   : > { %1189 = vmatpush.bf16.msrb.mxu3 %v1781_v57  ;;  %v1678_v57 = vld [vmem:[#allocation8 + $0x17c] sm:$0xf0]  ;;  %v1901_v62 = vor.u32 %v2052_v54, %v1900_v53  ;;  %v1760_v53 = vld [vmem:[#allocation8 + $0x208] sm:$0xf]  ;;  %v2017_v54 = vld [vmem:[#allocation8 + $0x220] sm:$0xf0] }
  0x77   : > { %v2004_v8 = vld [vmem:[#allocation8 + $0x1b8] sm:$0xf0]  ;;  %v1908_v19 = vld [vmem:[#allocation8 + $0x328] sm:$0xf]  ;;  %v2053_v20 = vld [vmem:[#allocation8 + $0x340] sm:$0xf0] }
  0x78   : > { %1200 = vmatpush.bf16.msra.mxu0 %v1617_v50  ;;  %v1656_v23 = vld [vmem:[#allocation8 + $0x130] sm:$0xf]  ;;  %v1990_v24 = vld [vmem:[#allocation8 + $0x148] sm:$0xf0]  ;;  %s2061_s26 = smul.u32 28, %s2550_s12  ;;  %s1317_s16 = scalar_lea.sflag [#allocation4], %s2550_s12 }
  0x79   : > { %1213 = vmatpush.bf16.msra.mxu1 %v1841_v51  ;;  %1177 = vmatpush.bf16.msrb.mxu2 %v1529_v5  ;;  %v1709_v51 = vor.u32 %v2000_v37, %v1706_v38  ;;  %v1986_v5 = vld [vmem:[#allocation8 + $0x12c] sm:$0xf]  ;;  %s2062_s27 = smul.u32 28, %s2456_s25  ;;  %s2338_s23 = scalar_lea.hbm %s2644_s5, 56 }
  0x7a   : > { %1190 = vmatpush.bf16.msrb.mxu3 %v1753_v9  ;;  %s2596_s7 = scalar_lea.vmem [#allocation11], %s2061_s26 }
  0x7b   : > { %s1328_s30 = scalar_lea.hbm %s2644_s5, %s2062_s27  ;;  %s1330_s8 = sshll.u32 %s2596_s7, 4  ;;  %s1331_s8 = int_to_ptr.vmem [resolvable:$true] %s1330_s8 }
  0x7c   : > { %1201 = vmatpush.bf16.msra.mxu0 %v1589_v58  ;;  %v2049_v58 = vld [vmem:[#allocation8 + $0x324] sm:$0xf]  ;;  %s1332_s9 = sshll.u32 %s1328_s30, 4  ;;  %s1333_s9 = int_to_ptr.hbm [resolvable:$true] %s1332_s9 }
  0x7d   : > { %1214 = vmatpush.bf16.msra.mxu1 %v1813_v59  ;;  %1178 = vmatpush.bf16.msrb.mxu2 %v1501_v17  ;;  %v1902_v59 = vld [vmem:[#allocation8 + $0x33c] sm:$0xf0]  ;;  %v1979_v17 = vld [vmem:[#allocation8 + $0xf4] sm:$0xf]  ;;  %s2332_s17 = sshra.s32 %s1333_s9, 4  ;;  %s2333_s17 = int_to_ptr.hbm [resolvable:$true] %s2332_s17 }
  0x7e   : > { %1191 = vmatpush.bf16.msrb.mxu3 %v1725_v21  ;;  %v1905_v2 = vor.u32 %v2049_v58, %v1902_v59  ;;  %v1621_v21 = vor.u32 %v1982_v12, %v1620_v11  ;;  %v1762_v58 = vld [vmem:[#allocation8 + $0x224] sm:$0xf0]  ;;  %v1537_v59 = vor.u32 %v1961_v49, %v1536_v48  ;;  %v1544_v48 = vld [vmem:[#allocation8 + $0x50] sm:$0xf]  ;;  %v1962_v49 = vld [vmem:[#allocation8 + $0x68] sm:$0xf0]  ;;  %p2339_p12 = scmp.lt.s32.totalorder %s2333_s17, %s2644_s5 }
  0x7f   : > { %s2334_s25 = scalar_lea.hbm %s2333_s17, 28 }
  0x80   : > { %1202 = vmatpush.bf16.msra.mxu0 %v1561_v63  ;;  %v1648_v63 = vld [vmem:[#allocation8 + $0x128] sm:$0xf]  ;;  %p2335_p1 = scmp.ne.s32.totalorder %s2333_s17, %s2334_s25  ;;  %p2340_p7 = scmp.lt.s32.totalorder %s2338_s23, %s2334_s25 }
  0x81   : > { %1215 = vmatpush.bf16.msra.mxu1 %v1785_v1  ;;  %v1681_v1 = vor.u32 %v1993_v55, %v1678_v57  ;;  %v1649_v9 = vor.u32 %v1989_v0, %v1648_v63  ;;  %v1958_v55 = vld [vmem:[#allocation8 + $0x4c] sm:$0xf]  ;;  %v1732_v63 = vld [vmem:[#allocation8 + $0x1d0] sm:$0xf] }
  0x82   : > { %v2014_v57 = vld [vmem:[#allocation8 + $0x20c] sm:$0xf]  ;;  %p2336_p3 = pnand %p2335_p1, %p2519_p4  ;;  %p2341_p8 = por %p2340_p7, %p2339_p12 }
  0x84   : > { %1203 = vmatpush.bf16.msra.mxu0 %v1533_v10  ;;  %v1873_v10 = vor.u32 %v2045_v4, %v1872_v3  ;;  %v1951_v3 = vld [vmem:[#allocation8 + $0x14] sm:$0xf]  ;;  %v1510_v4 = vld [vmem:[#allocation8 + $0x2c] sm:$0xf0]  ;;  %p2337_p5 = pneg %p2336_p3 }
  0x85   : > { %1216 = vmatpush.bf16.msra.mxu1 %v1757_v13  ;;  %v1653_v13 = vor.u32 %v1986_v5, %v1650_v6  ;;  %v2007_v5 = vld [vmem:[#allocation8 + $0x1d4] sm:$0xf]  ;;  %v1734_v6 = vld [vmem:[#allocation8 + $0x1ec] sm:$0xf0] }
  0x86   : > { %p2342_p9 = pnand %p2341_p8, %p2337_p5 }
  0x88   : > { %1204 = vmatpush.bf16.msra.mxu0 %v1505_v22  ;;  %v1845_v22 = vor.u32 %v2038_v16, %v1844_v15  ;;  %v1713_v15 = vor.u32 %v2004_v8, %v1712_v7 }
  0x89   : > { %1217 = vmatpush.bf16.msra.mxu1 %v1729_v25  ;;  %v1625_v25 = vor.u32 %v1979_v17, %v1622_v18  ;;  %v1684_v17 = vld [vmem:[#allocation8 + $0x168] sm:$0xf]  ;;  %v1997_v18 = vld [vmem:[#allocation8 + $0x180] sm:$0xf0] }
  0xc8   : > { %v374_v29 = vpop.f32.mrf.mxu0 }
  0xc9   : > { %v375_v30 = vadd.f32 %v374_v29, %v317_v27  ;;  %v387_v31 = vpop.f32.mrf.mxu1  ;;  %v1816_v27 = vld [vmem:[#allocation8 + $0x278] sm:$0xf]  ;;  %v1972_v29 = vld [vmem:[#allocation8 + $0xbc] sm:$0xf] }
  0xca   : > { %v388_v35 = vadd.f32 %v387_v31, %v318_v28  ;;  %v2031_v28 = vld [vmem:[#allocation8 + $0x290] sm:$0xf0]  ;;  %v2028_v31 = vld [vmem:[#allocation8 + $0x27c] sm:$0xf] }
  0xcb   : > { %vm391_vm1 = vcmp.gt.f32.partialorder %v375_v30, 0.0  ;;  %v393_v39 = vmul.f32 0.1, %v375_v30  ;;  %v1817_v34 = vor.u32 %v2031_v28, %v1816_v27  ;;  %v1821_v38 = vor.u32 %v2028_v31, %v1818_v32  ;;  %v1852_v31 = vld [vmem:[#allocation8 + $0x2b8] sm:$0xf] }
  0xcc   : > { %vm392_vm2 = vcmp.gt.f32.partialorder %v388_v35, 0.0  ;;  %v394_v41 = vmul.f32 0.1, %v388_v35  ;;  %v1657_v27 = vor.u32 %v1990_v24, %v1656_v23  ;;  %v2039_v32 = vld [vmem:[#allocation8 + $0x2d0] sm:$0xf0] }
  0xcd   : > { %v395_v43 = vsel %vm391_vm1, %v375_v30, %v393_v39  ;;  %v1594_v30 = vld [vmem:[#allocation8 + $0xd4] sm:$0xf0]  ;;  %v1788_v39 = vld [vmem:[#allocation8 + $0x240] sm:$0xf] }
  0xce   : > { %v2571_v44 = vpack.c.bf16 %v395_v43, %v395_v43  ;;  %v396_v45 = vsel %vm392_vm2, %v388_v35, %v394_v41  ;;  %v1564_v35 = vld [vmem:[#allocation8 + $0x80] sm:$0xf]  ;;  %v1597_v37 = vor.u32 %v1972_v29, %v1594_v30  ;;  %v1965_v41 = vld [vmem:[#allocation8 + $0x84] sm:$0xf]  ;;  %v1628_v29 = vld [vmem:[#allocation8 + $0xf8] sm:$0xf] }
  0xcf   : > { %v2573_v50 = vpack.c.bf16 %v396_v45, %v396_v45  ;;  %v2021_v43 = vld [vmem:[#allocation8 + $0x244] sm:$0xf]  ;;  %v1790_v45 = vld [vmem:[#allocation8 + $0x25c] sm:$0xf0]  ;;  %v1983_v30 = vld [vmem:[#allocation8 + $0x110] sm:$0xf0] }
  0xd0   : > { %v376_v56 = vpop.f32.mrf.mxu0  ;;  %1127 = vmatmul.bf16.vlgmr.msra.gmra.mxu2 %v2571_v44  ;;  %1153 = vmatmul.bf16.vlgmr.msrb.gmra.mxu0 %v2571_v44 }
  0xd1   : > { %v389_v60 = vpop.f32.mrf.mxu1  ;;  %1140 = vmatmul.bf16.vlgmr.msra.gmra.mxu3 %v2573_v50  ;;  %1166 = vmatmul.bf16.vlgmr.msrb.gmra.mxu1 %v2573_v50  ;;  %v1538_v56 = vld [vmem:[#allocation8 + $0x64] sm:$0xf0] }
  0xd2   : > { %1223 = vmatpush.bf16.msra.mxu2 %v1705_v46  ;;  %1236 = vmatpush.bf16.msra.mxu3 %v1929_v47  ;;  %v1565_v46 = vor.u32 %v1968_v36, %v1564_v35  ;;  %v1789_v47 = vor.u32 %v2024_v40, %v1788_v39  ;;  %v1761_v60 = vor.u32 %v2017_v54, %v1760_v53  ;;  %v1600_v35 = vld [vmem:[#allocation8 + $0xc0] sm:$0xf]  ;;  %v1976_v36 = vld [vmem:[#allocation8 + $0xd8] sm:$0xf0] }
  0xd3   : > { %1249 = vmatpush.bf16.msrb.mxu0 %v1709_v51  ;;  %1262 = vmatpush.bf16.msrb.mxu1 %v1933_v52  ;;  %v1569_v51 = vor.u32 %v1965_v41, %v1566_v42  ;;  %v1793_v52 = vor.u32 %v2021_v43, %v1790_v45  ;;  %v1541_v0 = vor.u32 %v1958_v55, %v1538_v56  ;;  %v1572_v41 = vld [vmem:[#allocation8 + $0x88] sm:$0xf]  ;;  %v1969_v42 = vld [vmem:[#allocation8 + $0xa0] sm:$0xf0]  ;;  %v1516_v55 = vld [vmem:[#allocation8 + $0x18] sm:$0xf] }
  0xd4   : > { %v1601_v39 = vor.u32 %v1976_v36, %v1600_v35  ;;  %v1796_v43 = vld [vmem:[#allocation8 + $0x248] sm:$0xf]  ;;  %v2025_v45 = vld [vmem:[#allocation8 + $0x260] sm:$0xf0]  ;;  %v1545_v53 = vor.u32 %v1962_v49, %v1544_v48  ;;  %v1955_v56 = vld [vmem:[#allocation8 + $0x30] sm:$0xf0] }
  0xd6   : > { %1224 = vmatpush.bf16.msra.mxu2 %v1677_v61  ;;  %1237 = vmatpush.bf16.msra.mxu3 %v1901_v62  ;;  %v1508_v61 = vld [vmem:[#allocation8 + $0x10] sm:$0xf]  ;;  %v1954_v62 = vld [vmem:[#allocation8 + $0x28] sm:$0xf0] }
  0xd7   : > { %1250 = vmatpush.bf16.msrb.mxu0 %v1681_v1  ;;  %1263 = vmatpush.bf16.msrb.mxu1 %v1905_v2  ;;  %v1765_v1 = vor.u32 %v2014_v57, %v1762_v58  ;;  %v2010_v2 = vld [vmem:[#allocation8 + $0x1e8] sm:$0xf0]  ;;  %v1509_v11 = vor.u32 %v1954_v62, %v1508_v61  ;;  %v1740_v57 = vld [vmem:[#allocation8 + $0x1d8] sm:$0xf]  ;;  %v2011_v58 = vld [vmem:[#allocation8 + $0x1f0] sm:$0xf0] }
  0xd8   : > { %v1733_v12 = vor.u32 %v2010_v2, %v1732_v63  ;;  %v2589_v61 = vld [vmem:[#allocation10] sm:$0xff] }
  0xd9   : > { %v530_v62 = vperm.slane %v2589_v61, 1  ;;  %v529_v2 = vperm.slane %v2589_v61, 0  ;;  %v535_v48 = vperm.slane %v2589_v61, 6 }
  0xda   : > { %1225 = vmatpush.bf16.msra.mxu2 %v1649_v9  ;;  %1238 = vmatpush.bf16.msra.mxu3 %v1873_v10  ;;  %v1936_v9 = vld [vmem:[#allocation8 + $0x360] sm:$0xf]  ;;  %v2060_v10 = vld [vmem:[#allocation8 + $0x378] sm:$0xf0] }
  0xdb   : > { %1251 = vmatpush.bf16.msrb.mxu0 %v1653_v13  ;;  %1264 = vmatpush.bf16.msrb.mxu1 %v1877_v14  ;;  %v1513_v13 = vor.u32 %v1951_v3, %v1510_v4  ;;  %v1737_v14 = vor.u32 %v2007_v5, %v1734_v6  ;;  %v1937_v16 = vor.u32 %v2060_v10, %v1936_v9 }
  0xde   : > { %1226 = vmatpush.bf16.msra.mxu2 %v1621_v21  ;;  %1239 = vmatpush.bf16.msra.mxu3 %v1845_v22  ;;  %v1685_v21 = vor.u32 %v1997_v18, %v1684_v17  ;;  %v1909_v22 = vor.u32 %v2053_v20, %v1908_v19  ;;  %v531_v17 = vperm.slane %v2589_v61, 2 }
  0xdf   : > { %1252 = vmatpush.bf16.msrb.mxu0 %v1625_v25  ;;  %1265 = vmatpush.bf16.msrb.mxu1 %v1849_v26  ;;  %v1880_v25 = vld [vmem:[#allocation8 + $0x2f0] sm:$0xf]  ;;  %v2046_v26 = vld [vmem:[#allocation8 + $0x308] sm:$0xf0] }
  0xe0   : > { %1179 = vmatmul.bf16.vlgmr.msrb.gmra.mxu2 %v2571_v44  ;;  %1205 = vmatmul.bf16.vlgmr.msra.gmra.mxu0 %v2571_v44  ;;  %v1881_v28 = vor.u32 %v2046_v26, %v1880_v25 }
  0xe1   : > { %1192 = vmatmul.bf16.vlgmr.msrb.gmra.mxu3 %v2573_v50  ;;  %1218 = vmatmul.bf16.vlgmr.msra.gmra.mxu1 %v2573_v50 }
  0xe2   : > { %1227 = vmatpush.bf16.msra.mxu2 %v1593_v33  ;;  %1240 = vmatpush.bf16.msra.mxu3 %v1817_v34  ;;  %v1629_v33 = vor.u32 %v1983_v30, %v1628_v29  ;;  %v1853_v34 = vor.u32 %v2039_v32, %v1852_v31 }
  0xe3   : > { %1253 = vmatpush.bf16.msrb.mxu0 %v1597_v37  ;;  %1266 = vmatpush.bf16.msrb.mxu1 %v1821_v38  ;;  %v1824_v37 = vld [vmem:[#allocation8 + $0x280] sm:$0xf]  ;;  %v2032_v38 = vld [vmem:[#allocation8 + $0x298] sm:$0xf0] }
  0xe4   : > { %v1825_v40 = vor.u32 %v2032_v38, %v1824_v37 }
  0xe6   : > { %1228 = vmatpush.bf16.msra.mxu2 %v1565_v46  ;;  %1241 = vmatpush.bf16.msra.mxu3 %v1789_v47  ;;  %v1573_v46 = vor.u32 %v1969_v42, %v1572_v41  ;;  %v1797_v47 = vor.u32 %v2025_v45, %v1796_v43 }
  0xe7   : > { %1254 = vmatpush.bf16.msrb.mxu0 %v1569_v51  ;;  %1267 = vmatpush.bf16.msrb.mxu1 %v1793_v52  ;;  %v1768_v51 = vld [vmem:[#allocation8 + $0x210] sm:$0xf]  ;;  %v2018_v52 = vld [vmem:[#allocation8 + $0x228] sm:$0xf0] }
  0xe8   : > { %v1769_v54 = vor.u32 %v2018_v52, %v1768_v51 }
  0xea   : > { %1229 = vmatpush.bf16.msra.mxu2 %v1537_v59  ;;  %1242 = vmatpush.bf16.msra.mxu3 %v1761_v60  ;;  %v1517_v59 = vor.u32 %v1955_v56, %v1516_v55  ;;  %v1741_v60 = vor.u32 %v2011_v58, %v1740_v57 }
  0xeb   : > { %1255 = vmatpush.bf16.msrb.mxu0 %v1541_v0  ;;  %1268 = vmatpush.bf16.msrb.mxu1 %v1765_v1 }
  0xee   : > { %1230 = vmatpush.bf16.msra.mxu2 %v1509_v11  ;;  %1243 = vmatpush.bf16.msra.mxu3 %v1733_v12 }
  0xef   : > { %1256 = vmatpush.bf16.msrb.mxu0 %v1513_v13  ;;  %1269 = vmatpush.bf16.msrb.mxu1 %v1737_v14 }
  0xf1   : > { %1231 = vmatmul.bf16.vlgmr.msra.gmra.mxu2 %v2571_v44  ;;  %1244 = vmatmul.bf16.vlgmr.msra.gmra.mxu3 %v2573_v50 }
  0xf2   : > { %1275 = vmatpush.bf16.msrb.mxu2 %v1713_v15  ;;  %1288 = vmatpush.bf16.msrb.mxu3 %v1937_v16 }
  0xf3   : > { %1257 = vmatmul.bf16.vlgmr.msrb.gmra.mxu0 %v2571_v44  ;;  %1270 = vmatmul.bf16.vlgmr.msrb.gmra.mxu1 %v2573_v50 }
  0xf6   : > { %1276 = vmatpush.bf16.msrb.mxu2 %v1685_v21  ;;  %1289 = vmatpush.bf16.msrb.mxu3 %v1909_v22 }
  0xfa   : > { %1277 = vmatpush.bf16.msrb.mxu2 %v1657_v27  ;;  %1290 = vmatpush.bf16.msrb.mxu3 %v1881_v28  ;;  %v534_v27 = vperm.slane %v2589_v61, 5 }
  0xfe   : > { %1278 = vmatpush.bf16.msrb.mxu2 %v1629_v33  ;;  %1291 = vmatpush.bf16.msrb.mxu3 %v1853_v34  ;;  %v533_v34 = vperm.slane %v2589_v61, 4 }
 0x102   : > { %1279 = vmatpush.bf16.msrb.mxu2 %v1601_v39  ;;  %1292 = vmatpush.bf16.msrb.mxu3 %v1825_v40 }
 0x106   : > { %1280 = vmatpush.bf16.msrb.mxu2 %v1573_v46  ;;  %1293 = vmatpush.bf16.msrb.mxu3 %v1797_v47 }
 0x10a   : > { %1281 = vmatpush.bf16.msrb.mxu2 %v1545_v53  ;;  %1294 = vmatpush.bf16.msrb.mxu3 %v1769_v54 }
 0x10e   : > { %1282 = vmatpush.bf16.msrb.mxu2 %v1517_v59  ;;  %1295 = vmatpush.bf16.msrb.mxu3 %v1741_v60 }
 0x111   : > { %1283 = vmatmul.bf16.vlgmr.msrb.gmra.mxu2 %v2571_v44  ;;  %1296 = vmatmul.bf16.vlgmr.msrb.gmra.mxu3 %v2573_v50  ;;  %v532_v50 = vperm.slane %v2589_v61, 3 }
 0x14d   : > { %v1154_v63 = vpop.f32.mrf.mxu0 }
 0x14e   : > { %v1167_v0 = vpop.f32.mrf.mxu1  ;;  %v1155_v1 = vadd.f32 %v1154_v63, %v530_v62 }
 0x150   : > { %v1168_v3 = vadd.f32 %v1167_v0, %v1155_v1 }
 0x152   : > { %2154 = vtanh.f32 %v1168_v3 }
 0x153   : > { %v1128_v4 = vpop.f32.mrf.mxu2 }
 0x154   : > { %v1129_v5 = vadd.f32 %v1128_v4, %v529_v2  ;;  %v1141_v6 = vpop.f32.mrf.mxu3 }
 0x155   : > { %v1156_v7 = vpop.f32.mrf.mxu0 }
 0x156   : > { %v1142_v8 = vadd.f32 %v1141_v6, %v1129_v5  ;;  %v1169_v9 = vpop.f32.mrf.mxu1 }
 0x158   : > { %2156 = vtanh.f32 %v1142_v8  ;;  %v2155_v11 = vpop.eup %2154 }
 0x15b   : > { %v1130_v44 = vpop.f32.mrf.mxu2 }
 0x15c   : > { %v1143_v10 = vpop.f32.mrf.mxu3 }
 0x15d   : > { %v1206_v12 = vpop.f32.mrf.mxu0 }
 0x15e   : > { %v2157_v13 = vpop.eup %2156  ;;  %v1219_v14 = vpop.f32.mrf.mxu1  ;;  %v1207_v16 = vadd.f32 %v1206_v12, %v532_v50 }
 0x15f   : > { %v1308_v15 = vpack.c.bf16 %v2155_v11, %v2157_v13 }
 0x160   : > { %v1220_v18 = vadd.f32 %v1219_v14, %v1207_v16 }
 0x161   : > { %1312 = vst [vmem:[%s2596_s7] sm:$0xff] %v1308_v15 }
 0x162   : > { %2158 = vtanh.f32 %v1220_v18 }
 0x163   : > { %v1180_v19 = vpop.f32.mrf.mxu2 }
 0x164   : > { %v1181_v20 = vadd.f32 %v1180_v19, %v531_v17  ;;  %v1193_v21 = vpop.f32.mrf.mxu3 }
 0x165   : > { %v1208_v22 = vpop.f32.mrf.mxu0 }
 0x166   : > { %v1194_v23 = vadd.f32 %v1193_v21, %v1181_v20  ;;  %v1221_v24 = vpop.f32.mrf.mxu1 }
 0x168   : > { %2160 = vtanh.f32 %v1194_v23  ;;  %v2159_v28 = vpop.eup %2158 }
 0x16b   : > { %v1182_v25 = vpop.f32.mrf.mxu2 }
 0x16c   : > { %v1195_v26 = vpop.f32.mrf.mxu3 }
 0x16e   : > { %v2161_v29 = vpop.eup %2160 }
 0x16f   : > { %v1309_v30 = vpack.c.bf16 %v2159_v28, %v2161_v29 }
 0x170   : > { %v1258_v31 = vpop.f32.mrf.mxu0  ;;  %v1271_v32 = vpop.f32.mrf.mxu1 }
 0x171   : > { %v1259_v33 = vadd.f32 %v1258_v31, %v534_v27  ;;  %1313 = vst [vmem:[%s2596_s7 + $0x8] sm:$0xff] %v1309_v30 }
 0x173   : > { %v1272_v35 = vadd.f32 %v1271_v32, %v1259_v33 }
 0x174   : > { %v1232_v36 = vpop.f32.mrf.mxu2  ;;  %v1245_v37 = vpop.f32.mrf.mxu3 }
 0x175   : > { %v1233_v38 = vadd.f32 %v1232_v36, %v533_v34  ;;  %2162 = vtanh.f32 %v1272_v35 }
 0x177   : > { %v1246_v39 = vadd.f32 %v1245_v37, %v1233_v38 }
 0x178   : > { %v1260_v40 = vpop.f32.mrf.mxu0  ;;  %v1273_v41 = vpop.f32.mrf.mxu1 }
 0x179   : > { %2164 = vtanh.f32 %v1246_v39 }
 0x17b   : > { %v2163_v45 = vpop.eup %2162 }
 0x17c   : > { %v1234_v42 = vpop.f32.mrf.mxu2  ;;  %v1247_v43 = vpop.f32.mrf.mxu3 }
 0x17f   : > { %v2165_v46 = vpop.eup %2164 }
 0x180   : > { %v1310_v47 = vpack.c.bf16 %v2163_v45, %v2165_v46 }
 0x182   : > { %1314 = vst [vmem:[%s2596_s7 + $0x10] sm:$0xff] %v1310_v47 }
 0x194   : > { %v1284_v49 = vpop.f32.mrf.mxu2  ;;  %v1297_v51 = vpop.f32.mrf.mxu3 }
 0x195   : > { %v1285_v52 = vadd.f32 %v1284_v49, %v535_v48 }
 0x197   : > { %v1298_v53 = vadd.f32 %v1297_v51, %v1285_v52 }
 0x199   : > { %2166 = vtanh.f32 %v1298_v53 }
 0x19c   : > { %v1286_v54 = vpop.f32.mrf.mxu2  ;;  %v1299_v55 = vpop.f32.mrf.mxu3 }
 0x19f   : > { %v2167_v56 = vpop.eup %2166 }
 0x1a0   : > { %v1311_v57 = vpack.c.bf16 %v2167_v56, %v2167_v56 }
 0x1a2   : > { %1315 = vst [vmem:[%s2596_s7 + $0x18] sm:$0xf] %v1311_v57 }
 0x1a3   : > { %2345 = shalt.err (!%p2342_p9)
}
 0x1a4   : > { %2081 = dma.vmem_to_hbm [thread:$0]  (%p2519_p4), %s1331_s8, 448, %s1333_s9, %s1317_s16  }
 0x1a5 PF: > { %s1344_s12 = sand.u32 1, %s2380_s18   ;;  %p2652_p10 = scmp.ge.s32.totalorder %s2392_s21, 2 }
 0x1a6   : > { %s1345_s26 = scalar_lea.sflag [#allocation4], %s1344_s12 }
 0x1a7   : > { %p2101_p13 = pnand %p2652_p10, %p2523_p6 }
 0x1a9   : > { %p2102_p11 = pneg %p2101_p13 }
 0x1ab   : > { %2375 = dma.done.wait (%p2102_p11), %s1345_s26, 448  }
 0x1ac   : > { %2377 = vsyncadd (%p2102_p11), %s1345_s26, 4294966848  ;;  %p20_p0 = scmp.ge.s32.totalorder %s2493_s6, 4   ;;  %s2653_s18 = smov %s2384_s19 }
 0x1ad   : > { %s2654_s19 = smov %s2388_s20  ;;  %s2655_s20 = smov %s2504_s10 }
 0x1ae   : > { %s2656_s21 = smov %s2493_s6  ;;  %22 = sbr.rel (!%p20_p0) target bundleno = 7 (0x7), region = 101 }
 0x1b3   :  { %1351 = vsyncpa [#allocation3], 1 }
 0x1b4   :  { %1353 = vsyncpa [#allocation3 + $0x1], 1 }
 0x1b5   :  { %1354 = vsyncpa [#allocation6], 1 }
 0x1b6   :  { %1355 = vsyncpa [#allocation9], 1 }
 0x1b7   :  { %1356 = vsyncpa [#allocation4], 1 }
 0x1b8   :  { %1358 = vsyncpa [#allocation4 + $0x1], 1 }

</bundles_post_ra>
